<compile_context>
chip_gen: v6e
topology: v6e:2x2x1
jax: 0.10.0
libtpu: 0.0.40
codegen_flags: <defaults>
</compile_context>

<pallas_src>
import jax
import jax.numpy as jnp
from jax.experimental import pallas as pl
from jax.experimental.pallas import tpu as pltpu  # noqa: F401  (kept for TPU-specific tuning hooks)

# ---- small, module-consistent hyperparameters (args) ----
N_NODES      = 16    # number of graph nodes in the batch
NUM_FEATURES = 32    # num_features
GAT_HIDDEN   = 8     # args.gat_hidden (per-head hidden dim)
NUM_HEADS    = 8     # heads concatenated -> fusion_ffn_global input = gat_hidden * 8
FFN_HIDDEN   = 32    # args.ffn_hidden_size
DRUG_NUMS    = 16    # args.drug_nums
NEG_SLOPE    = 0.2   # GAT attention LeakyReLU slope
# args.activation = 'ReLU', args.ffn_num_layers = 2  ->  ffn = [ReLU, Dropout, Linear]

EMB_DIM   = GAT_HIDDEN * NUM_HEADS   # 64
WCAT_COLS = EMB_DIM + NUM_HEADS      # 72  ([W | W@a_src])


# -------------------- fused kernel: GAT encoder + fusion FFN + head + sigmoid --------------------
def fused_gat_ffn_kernel(x_ref, adj_ref, wcat_ref, wdstt_ref,
                         w1_ref, b1_ref, w2_ref, b2_ref,
                         emb_ref, out_ref):
    x   = x_ref[...]                                   # (N, F)
    adj = adj_ref[...]                                 # (N, N) dense 0/1 mask

    # (1) Node transform + folded src-attention projection: ONE MXU matmul (16,32)x(32,72).
    h_all = jnp.dot(x, wcat_ref[...], preferred_element_type=jnp.float32)   # (N, 72)
    wh    = h_all[:, :EMB_DIM]                         # (N, H*D) node-major, lane-dense
    e_src = h_all[:, EMB_DIM:WCAT_COLS]                # (N, H)   e_src[i,h] = x[i]·(W a_src)[:,h]

    # (2) Dst-attention projection produced directly head-major (H, N): one tiny matmul,
    #     contracting the feature dims (A·Bᵀ form) so no in-kernel transpose is needed.
    e_dst_t = jax.lax.dot_general(wdstt_ref[...], x, (((1,), (1,)), ((), ())),
                                  preferred_element_type=jnp.float32)       # (H, N)

    # (3) Attention logits for all heads stacked along sublanes: (H*N, N).
    #     Per-head outer sum is a safe (N,1)+(1,N) broadcast; pieces concat on the sublane axis.
    rows = [e_src[:, h:h + 1] + e_dst_t[h:h + 1, :] for h in range(NUM_HEADS)]
    logits = jnp.concatenate(rows, axis=0)                                  # (H*N, N)
    logits = jnp.where(logits > 0, logits, NEG_SLOPE * logits)              # LeakyReLU(0.2)
    adj_all = jnp.concatenate([adj] * NUM_HEADS, axis=0)                    # (H*N, N)
    logits = jnp.where(adj_all > 0, logits, jnp.float32(-1e9))              # mask non-edges

    # (4) One masked softmax pass (single max / exp / sum) for all 8 heads.
    #     (max-subtraction also makes all-masked rows safe: uniform, never 0/0.)
    logits = logits - jnp.max(logits, axis=-1, keepdims=True)
    p = jnp.exp(logits)
    alpha = p * pl.reciprocal(jnp.sum(p, axis=-1, keepdims=True), approx=True)  # (H*N, N)

    # (5) Neighbor aggregation for ALL heads: ONE MXU matmul (128,16)x(16,64).
    #     full[h*N+i, c] = sum_j alpha[h,i,j] * wh[j,c]; cross-head columns are discarded below.
    full = jnp.dot(alpha, wh, preferred_element_type=jnp.float32)           # (H*N, H*D)

    # (6) Keep head h's own column block from its row block and sum -> (N, H*D) node-major.
    cidx = jax.lax.broadcasted_iota(jnp.int32, (N_NODES, EMB_DIM), 1)       # column index
    agg = jnp.zeros((N_NODES, EMB_DIM), jnp.float32)
    for h in range(NUM_HEADS):
        blk  = full[h * N_NODES:(h + 1) * N_NODES, :]                       # (N, H*D) slice
        keep = jnp.logical_and(cidx >= h * GAT_HIDDEN, cidx < (h + 1) * GAT_HIDDEN)
        agg = agg + jnp.where(keep, blk, 0.0)

    # (7) ELU inter-layer nonlinearity; clamped exp argument so the dead branch never overflows.
    #     emb stored lane-dense as (N, 64) — no wrapper transpose/reshape needed any more.
    emb = jnp.where(agg > 0, agg, jnp.exp(jnp.minimum(agg, 0.0)) - 1.0)
    emb_ref[...] = emb

    # (8) fusion_ffn_global Linear -> ffn (ReLU -> Dropout(identity) -> Linear) -> sigmoid.
    fused = jnp.dot(emb, w1_ref[...], preferred_element_type=jnp.float32) + b1_ref[...]
    hact = jnp.maximum(fused, 0.0)
    o = jnp.dot(hact, w2_ref[...], preferred_element_type=jnp.float32) + b2_ref[...]
    out_ref[...] = pl.reciprocal(1.0 + jnp.exp(-o), approx=True)            # sigmoid on the EUP


# -------------------- wrappers --------------------
def _full_spec(shape):
    ndim = len(shape)
    return pl.BlockSpec(shape, lambda *_: (0,) * ndim)


def prepare_params(params):
    """One-time weight re-layout (review item 6): do this at parameter-conversion time,
    NOT per forward call."""
    w = params["gat_w"]                                                    # (F, H*D)
    w3 = w.reshape(NUM_FEATURES, NUM_HEADS, GAT_HIDDEN)                    # (F, H, D)
    wsrc = jnp.einsum("fhd,hd->fh", w3, params["a_src"])                   # (F, H)
    wdst = jnp.einsum("fhd,hd->fh", w3, params["a_dst"])                   # (F, H)
    return {
        "wcat":   jnp.concatenate([w, wsrc], axis=1),                      # (F, H*D + H) = (32, 72)
        "wdst_t": jnp.transpose(wdst),                                     # (H, F) = (8, 32)
        "w1": params["w1"], "b1": params["b1"],
        "w2": params["w2"], "b2": params["b2"],
    }


def multi_layer_gat_forward(prep, batch, adj, return_embeddings=False):
    """Mirrors MultiLayerGAT.forward (eval mode: dropout = identity).
    `prep` comes from prepare_params()."""
    # Single fused kernel; gridless because the whole problem is a few KiB.
    # (For many graphs / larger N, add a leading graph grid axis with
    #  dimension_semantics=("parallel",) and >=2 blocks so v7x's second TensorCore is used;
    #  re-derive block sizes for v7x's smaller 64 MiB VMEM.)
    embeddings1, outputs_1 = pl.pallas_call(
        fused_gat_ffn_kernel,
        out_shape=(jax.ShapeDtypeStruct((N_NODES, EMB_DIM), jnp.float32),
                   jax.ShapeDtypeStruct((N_NODES, DRUG_NUMS), jnp.float32)),
        in_specs=[_full_spec(batch.shape), _full_spec(adj.shape),
                  _full_spec(prep["wcat"].shape), _full_spec(prep["wdst_t"].shape),
                  _full_spec(prep["w1"].shape), _full_spec(prep["b1"].shape),
                  _full_spec(prep["w2"].shape), _full_spec(prep["b2"].shape)],
        out_specs=(_full_spec((N_NODES, EMB_DIM)),
                   _full_spec((N_NODES, DRUG_NUMS))),
    )(batch, adj, prep["wcat"], prep["wdst_t"], prep["w1"], prep["b1"], prep["w2"], prep["b2"])

    outputs_g1 = outputs_1.reshape(-1)                                      # .view(-1)
    # TODO(synk): GcnInfomax (DGI_model1) source not provided; returning 0.0 placeholder loss.
    dgi_loss1 = jnp.float32(0.0)
    if return_embeddings:
        return outputs_1, embeddings1
    return outputs_g1, dgi_loss1


def init_params(key):
    ks = jax.random.split(key, 6)
    scale = lambda fan_in: 1.0 / jnp.sqrt(jnp.float32(fan_in))
    return {
        # GAT encoder: shared linear transform + per-head attention vectors
        "gat_w": jax.random.normal(ks[0], (NUM_FEATURES, EMB_DIM), jnp.float32) * scale(NUM_FEATURES),
        "a_src": jax.random.normal(ks[1], (NUM_HEADS, GAT_HIDDEN), jnp.float32) * scale(GAT_HIDDEN),
        "a_dst": jax.random.normal(ks[2], (NUM_HEADS, GAT_HIDDEN), jnp.float32) * scale(GAT_HIDDEN),
        # fusion_ffn_global: Linear(gat_hidden*8, ffn_hidden_size)
        "w1": jax.random.normal(ks[3], (EMB_DIM, FFN_HIDDEN), jnp.float32) * scale(EMB_DIM),
        "b1": jnp.zeros((1, FFN_HIDDEN), jnp.float32),
        # ffn final Linear(ffn_hidden_size, drug_nums)
        "w2": jax.random.normal(ks[4], (FFN_HIDDEN, DRUG_NUMS), jnp.float32) * scale(FFN_HIDDEN),
        "b2": jnp.zeros((1, DRUG_NUMS), jnp.float32),
    }


# -------------------- pure-JAX reference (natural (N, H*D) formulation) --------------------
def reference_forward(params, x, adj):
    w, a_src, a_dst = params["gat_w"], params["a_src"], params["a_dst"]
    h = jnp.dot(x, w)                                                     # (N, H*D)
    heads = []
    for hd in range(NUM_HEADS):
        wh = h[:, hd * GAT_HIDDEN:(hd + 1) * GAT_HIDDEN]                  # (N, D)
        es = jnp.dot(wh, a_src[hd])                                       # (N,)
        ed = jnp.dot(wh, a_dst[hd])                                       # (N,)
        logit = es[:, None] + ed[None, :]
        logit = jnp.where(logit > 0, logit, NEG_SLOPE * logit)
        logit = jnp.where(adj > 0, logit, -1e9)
        logit = logit - jnp.max(logit, axis=-1, keepdims=True)
        p = jnp.exp(logit)
        alpha = p / jnp.sum(p, axis=-1, keepdims=True)
        heads.append(jnp.dot(alpha, wh))
    out = jnp.concatenate(heads, axis=-1)                                 # (N, H*D)
    emb = jnp.where(out > 0, out, jnp.exp(jnp.minimum(out, 0.0)) - 1.0)   # ELU
    fused = jnp.dot(emb, params["w1"]) + params["b1"]
    o = jnp.dot(jnp.maximum(fused, 0.0), params["w2"]) + params["b2"]
    return jax.nn.sigmoid(o), emb


if __name__ == "__main__":
    key = jax.random.PRNGKey(0)
    k_feat, k_adj, k_par = jax.random.split(key, 3)

    # node features
    x = jax.random.normal(k_feat, (N_NODES, NUM_FEATURES), jnp.float32)

    # deterministic symmetric binary adjacency with self-loops (dense stand-in for sparse adj)
    a = (jax.random.uniform(k_adj, (N_NODES, N_NODES)) < 0.3).astype(jnp.float32)
    adj = jnp.clip(a + a.T + jnp.eye(N_NODES, dtype=jnp.float32), 0.0, 1.0)

    params = init_params(k_par)
    prep = prepare_params(params)    # one-time weight re-layout (hoisted out of the forward)

    # default path: (outputs_g1, DGI_loss placeholder)
    outputs_g1, dgi_loss1 = multi_layer_gat_forward(prep, x, adj)
    outputs_g1 = jax.block_until_ready(outputs_g1)

    # embeddings path
    outputs_1, embeddings1 = multi_layer_gat_forward(prep, x, adj, return_embeddings=True)
    outputs_1 = jax.block_until_ready(outputs_1)

    assert outputs_g1.shape == (N_NODES * DRUG_NUMS,)
    assert outputs_1.shape == (N_NODES, DRUG_NUMS)
    assert embeddings1.shape == (N_NODES, EMB_DIM)
    assert bool(jnp.all(jnp.isfinite(outputs_g1)))
    assert bool(jnp.all((outputs_g1 >= 0.0) & (outputs_g1 <= 1.0)))

    # correctness vs pure-JAX reference (loose tolerance: MXU f32 path + approx reciprocals)
    with jax.default_matmul_precision("float32"):
        ref_out, ref_emb = reference_forward(params, x, adj)
    ref_out = jax.block_until_ready(ref_out)
    assert bool(jnp.allclose(outputs_1, ref_out, rtol=2e-2, atol=2e-2))
    assert bool(jnp.allclose(embeddings1, ref_emb, rtol=2e-2, atol=2e-2))

    print("KERNEL_OK")
</pallas_src>

<mosaic_0001>
module attributes {stable_mosaic.version = 11 : i64} {
  func.func @fused_gat_ffn_kernel(%arg0: memref<16x32xf32, #tpu.memory_space<vmem>>, %arg1: memref<16x16xf32, #tpu.memory_space<vmem>>, %arg2: memref<32x72xf32, #tpu.memory_space<vmem>>, %arg3: memref<8x32xf32, #tpu.memory_space<vmem>>, %arg4: memref<64x32xf32, #tpu.memory_space<vmem>>, %arg5: memref<1x32xf32, #tpu.memory_space<vmem>>, %arg6: memref<32x16xf32, #tpu.memory_space<vmem>>, %arg7: memref<1x16xf32, #tpu.memory_space<vmem>>, %arg8: memref<16x64xf32, #tpu.memory_space<vmem>>, %arg9: memref<16x16xf32, #tpu.memory_space<vmem>>) attributes {dimension_semantics = [], scalar_prefetch = 0 : i64, scratch_operands = 0 : i64, tpu.core_type = #tpu.core_type<tc>} {
    %c0 = arith.constant 0 : index
    %c0_0 = arith.constant 0 : index
    %0 = vector.load %arg0[%c0, %c0_0] : memref<16x32xf32, #tpu.memory_space<vmem>>, vector<16x32xf32>
    %c0_1 = arith.constant 0 : index
    %c0_2 = arith.constant 0 : index
    %1 = vector.load %arg1[%c0_1, %c0_2] : memref<16x16xf32, #tpu.memory_space<vmem>>, vector<16x16xf32>
    %c0_3 = arith.constant 0 : index
    %c0_4 = arith.constant 0 : index
    %2 = vector.load %arg2[%c0_3, %c0_4] : memref<32x72xf32, #tpu.memory_space<vmem>>, vector<32x72xf32>
    %cst = arith.constant dense<0.000000e+00> : vector<16x72xf32>
    %3 = tpu.matmul %0, %2, %cst {dimension_numbers = #tpu.dot_dimension_numbers<[1], [0], [0], [1], [0, 0, 1, 1], [], []>} : vector<16x32xf32>, vector<32x72xf32>, vector<16x72xf32> -> vector<16x72xf32>
    %4 = vector.extract_strided_slice %3 {offsets = [0, 0], sizes = [16, 64], strides = [1, 1]} : vector<16x72xf32> to vector<16x64xf32>
    %5 = vector.extract_strided_slice %3 {offsets = [0, 64], sizes = [16, 8], strides = [1, 1]} : vector<16x72xf32> to vector<16x8xf32>
    %c0_5 = arith.constant 0 : index
    %c0_6 = arith.constant 0 : index
    %6 = vector.load %arg3[%c0_5, %c0_6] : memref<8x32xf32, #tpu.memory_space<vmem>>, vector<8x32xf32>
    %cst_7 = arith.constant dense<0.000000e+00> : vector<8x16xf32>
    %7 = tpu.matmul %6, %0, %cst_7 {dimension_numbers = #tpu.dot_dimension_numbers<[1], [1], [0], [0], [0, 0, 1, 0], [], []>} : vector<8x32xf32>, vector<16x32xf32>, vector<8x16xf32> -> vector<8x16xf32>
    %8 = vector.extract_strided_slice %5 {offsets = [0, 0], sizes = [16, 1], strides = [1, 1]} : vector<16x8xf32> to vector<16x1xf32>
    %9 = vector.extract_strided_slice %7 {offsets = [0, 0], sizes = [1, 16], strides = [1, 1]} : vector<8x16xf32> to vector<1x16xf32>
    %10 = vector.broadcast %8 : vector<16x1xf32> to vector<16x16xf32>
    %11 = vector.broadcast %9 : vector<1x16xf32> to vector<16x16xf32>
    %12 = arith.addf %10, %11 : vector<16x16xf32>
    %13 = vector.extract_strided_slice %5 {offsets = [0, 1], sizes = [16, 1], strides = [1, 1]} : vector<16x8xf32> to vector<16x1xf32>
    %14 = vector.extract_strided_slice %7 {offsets = [1, 0], sizes = [1, 16], strides = [1, 1]} : vector<8x16xf32> to vector<1x16xf32>
    %15 = vector.broadcast %13 : vector<16x1xf32> to vector<16x16xf32>
    %16 = vector.broadcast %14 : vector<1x16xf32> to vector<16x16xf32>
    %17 = arith.addf %15, %16 : vector<16x16xf32>
    %18 = vector.extract_strided_slice %5 {offsets = [0, 2], sizes = [16, 1], strides = [1, 1]} : vector<16x8xf32> to vector<16x1xf32>
    %19 = vector.extract_strided_slice %7 {offsets = [2, 0], sizes = [1, 16], strides = [1, 1]} : vector<8x16xf32> to vector<1x16xf32>
    %20 = vector.broadcast %18 : vector<16x1xf32> to vector<16x16xf32>
    %21 = vector.broadcast %19 : vector<1x16xf32> to vector<16x16xf32>
    %22 = arith.addf %20, %21 : vector<16x16xf32>
    %23 = vector.extract_strided_slice %5 {offsets = [0, 3], sizes = [16, 1], strides = [1, 1]} : vector<16x8xf32> to vector<16x1xf32>
    %24 = vector.extract_strided_slice %7 {offsets = [3, 0], sizes = [1, 16], strides = [1, 1]} : vector<8x16xf32> to vector<1x16xf32>
    %25 = vector.broadcast %23 : vector<16x1xf32> to vector<16x16xf32>
    %26 = vector.broadcast %24 : vector<1x16xf32> to vector<16x16xf32>
    %27 = arith.addf %25, %26 : vector<16x16xf32>
    %28 = vector.extract_strided_slice %5 {offsets = [0, 4], sizes = [16, 1], strides = [1, 1]} : vector<16x8xf32> to vector<16x1xf32>
    %29 = vector.extract_strided_slice %7 {offsets = [4, 0], sizes = [1, 16], strides = [1, 1]} : vector<8x16xf32> to vector<1x16xf32>
    %30 = vector.broadcast %28 : vector<16x1xf32> to vector<16x16xf32>
    %31 = vector.broadcast %29 : vector<1x16xf32> to vector<16x16xf32>
    %32 = arith.addf %30, %31 : vector<16x16xf32>
    %33 = vector.extract_strided_slice %5 {offsets = [0, 5], sizes = [16, 1], strides = [1, 1]} : vector<16x8xf32> to vector<16x1xf32>
    %34 = vector.extract_strided_slice %7 {offsets = [5, 0], sizes = [1, 16], strides = [1, 1]} : vector<8x16xf32> to vector<1x16xf32>
    %35 = vector.broadcast %33 : vector<16x1xf32> to vector<16x16xf32>
    %36 = vector.broadcast %34 : vector<1x16xf32> to vector<16x16xf32>
    %37 = arith.addf %35, %36 : vector<16x16xf32>
    %38 = vector.extract_strided_slice %5 {offsets = [0, 6], sizes = [16, 1], strides = [1, 1]} : vector<16x8xf32> to vector<16x1xf32>
    %39 = vector.extract_strided_slice %7 {offsets = [6, 0], sizes = [1, 16], strides = [1, 1]} : vector<8x16xf32> to vector<1x16xf32>
    %40 = vector.broadcast %38 : vector<16x1xf32> to vector<16x16xf32>
    %41 = vector.broadcast %39 : vector<1x16xf32> to vector<16x16xf32>
    %42 = arith.addf %40, %41 : vector<16x16xf32>
    %43 = vector.extract_strided_slice %5 {offsets = [0, 7], sizes = [16, 1], strides = [1, 1]} : vector<16x8xf32> to vector<16x1xf32>
    %44 = vector.extract_strided_slice %7 {offsets = [7, 0], sizes = [1, 16], strides = [1, 1]} : vector<8x16xf32> to vector<1x16xf32>
    %45 = vector.broadcast %43 : vector<16x1xf32> to vector<16x16xf32>
    %46 = vector.broadcast %44 : vector<1x16xf32> to vector<16x16xf32>
    %47 = arith.addf %45, %46 : vector<16x16xf32>
    %48 = tpu.concatenate %12, %17, %22, %27, %32, %37, %42, %47 in 0 : vector<16x16xf32>, vector<16x16xf32>, vector<16x16xf32>, vector<16x16xf32>, vector<16x16xf32>, vector<16x16xf32>, vector<16x16xf32>, vector<16x16xf32> -> vector<128x16xf32>
    %cst_8 = arith.constant 0.000000e+00 : f32
    %49 = vector.broadcast %cst_8 : f32 to vector<128x16xf32>
    %50 = arith.cmpf ogt, %48, %49 : vector<128x16xf32>
    %cst_9 = arith.constant 2.000000e-01 : f32
    %51 = vector.broadcast %cst_9 : f32 to vector<128x16xf32>
    %52 = arith.mulf %51, %48 : vector<128x16xf32>
    %53 = arith.select %50, %48, %52 : vector<128x16xi1>, vector<128x16xf32>
    %54 = tpu.concatenate %1, %1, %1, %1, %1, %1, %1, %1 in 0 : vector<16x16xf32>, vector<16x16xf32>, vector<16x16xf32>, vector<16x16xf32>, vector<16x16xf32>, vector<16x16xf32>, vector<16x16xf32>, vector<16x16xf32> -> vector<128x16xf32>
    %cst_10 = arith.constant 0.000000e+00 : f32
    %55 = vector.broadcast %cst_10 : f32 to vector<128x16xf32>
    %56 = arith.cmpf ogt, %54, %55 : vector<128x16xf32>
    %cst_11 = arith.constant -1.000000e+09 : f32
    %57 = vector.broadcast %cst_11 : f32 to vector<128x16xf32>
    %58 = arith.select %56, %53, %57 : vector<128x16xi1>, vector<128x16xf32>
    %cst_12 = arith.constant dense<0xFF800000> : vector<128xf32>
    %59 = vector.multi_reduction <maximumf>, %58, %cst_12 [1] : vector<128x16xf32> to vector<128xf32>
    %60 = vector.shape_cast %59 : vector<128xf32> to vector<128x1xf32>
    %61 = vector.broadcast %60 : vector<128x1xf32> to vector<128x16xf32>
    %62 = arith.subf %58, %61 : vector<128x16xf32>
    %63 = math.exp %62 : vector<128x16xf32>
    %cst_13 = arith.constant dense<0.000000e+00> : vector<128xf32>
    %64 = vector.multi_reduction <add>, %63, %cst_13 [1] : vector<128x16xf32> to vector<128xf32>
    %65 = vector.shape_cast %64 : vector<128xf32> to vector<128x1xf32>
    %66 = tpu.reciprocal %65 {approx = true} : vector<128x1xf32> -> vector<128x1xf32>
    %67 = vector.broadcast %66 : vector<128x1xf32> to vector<128x16xf32>
    %68 = arith.mulf %63, %67 : vector<128x16xf32>
    %cst_14 = arith.constant dense<0.000000e+00> : vector<128x64xf32>
    %69 = tpu.matmul %68, %4, %cst_14 {dimension_numbers = #tpu.dot_dimension_numbers<[1], [0], [0], [1], [0, 0, 1, 1], [], []>} : vector<128x16xf32>, vector<16x64xf32>, vector<128x64xf32> -> vector<128x64xf32>
    %70 = tpu.iota {dimensions = array<i32: 1>} : vector<16x64xi32>
    %cst_15 = arith.constant 0.000000e+00 : f32
    %71 = vector.broadcast %cst_15 : f32 to vector<16x64xf32>
    %72 = vector.extract_strided_slice %69 {offsets = [0, 0], sizes = [16, 64], strides = [1, 1]} : vector<128x64xf32> to vector<16x64xf32>
    %c0_i32 = arith.constant 0 : i32
    %73 = vector.broadcast %c0_i32 : i32 to vector<16x64xi32>
    %74 = arith.cmpi sge, %70, %73 : vector<16x64xi32>
    %c8_i32 = arith.constant 8 : i32
    %75 = vector.broadcast %c8_i32 : i32 to vector<16x64xi32>
    %76 = arith.cmpi slt, %70, %75 : vector<16x64xi32>
    %77 = arith.andi %74, %76 : vector<16x64xi1>
    %cst_16 = arith.constant 0.000000e+00 : f32
    %78 = vector.broadcast %cst_16 : f32 to vector<16x64xf32>
    %79 = arith.select %77, %72, %78 : vector<16x64xi1>, vector<16x64xf32>
    %80 = arith.addf %71, %79 : vector<16x64xf32>
    %81 = vector.extract_strided_slice %69 {offsets = [16, 0], sizes = [16, 64], strides = [1, 1]} : vector<128x64xf32> to vector<16x64xf32>
    %c8_i32_17 = arith.constant 8 : i32
    %82 = vector.broadcast %c8_i32_17 : i32 to vector<16x64xi32>
    %83 = arith.cmpi sge, %70, %82 : vector<16x64xi32>
    %c16_i32 = arith.constant 16 : i32
    %84 = vector.broadcast %c16_i32 : i32 to vector<16x64xi32>
    %85 = arith.cmpi slt, %70, %84 : vector<16x64xi32>
    %86 = arith.andi %83, %85 : vector<16x64xi1>
    %cst_18 = arith.constant 0.000000e+00 : f32
    %87 = vector.broadcast %cst_18 : f32 to vector<16x64xf32>
    %88 = arith.select %86, %81, %87 : vector<16x64xi1>, vector<16x64xf32>
    %89 = arith.addf %80, %88 : vector<16x64xf32>
    %90 = vector.extract_strided_slice %69 {offsets = [32, 0], sizes = [16, 64], strides = [1, 1]} : vector<128x64xf32> to vector<16x64xf32>
    %c16_i32_19 = arith.constant 16 : i32
    %91 = vector.broadcast %c16_i32_19 : i32 to vector<16x64xi32>
    %92 = arith.cmpi sge, %70, %91 : vector<16x64xi32>
    %c24_i32 = arith.constant 24 : i32
    %93 = vector.broadcast %c24_i32 : i32 to vector<16x64xi32>
    %94 = arith.cmpi slt, %70, %93 : vector<16x64xi32>
    %95 = arith.andi %92, %94 : vector<16x64xi1>
    %cst_20 = arith.constant 0.000000e+00 : f32
    %96 = vector.broadcast %cst_20 : f32 to vector<16x64xf32>
    %97 = arith.select %95, %90, %96 : vector<16x64xi1>, vector<16x64xf32>
    %98 = arith.addf %89, %97 : vector<16x64xf32>
    %99 = vector.extract_strided_slice %69 {offsets = [48, 0], sizes = [16, 64], strides = [1, 1]} : vector<128x64xf32> to vector<16x64xf32>
    %c24_i32_21 = arith.constant 24 : i32
    %100 = vector.broadcast %c24_i32_21 : i32 to vector<16x64xi32>
    %101 = arith.cmpi sge, %70, %100 : vector<16x64xi32>
    %c32_i32 = arith.constant 32 : i32
    %102 = vector.broadcast %c32_i32 : i32 to vector<16x64xi32>
    %103 = arith.cmpi slt, %70, %102 : vector<16x64xi32>
    %104 = arith.andi %101, %103 : vector<16x64xi1>
    %cst_22 = arith.constant 0.000000e+00 : f32
    %105 = vector.broadcast %cst_22 : f32 to vector<16x64xf32>
    %106 = arith.select %104, %99, %105 : vector<16x64xi1>, vector<16x64xf32>
    %107 = arith.addf %98, %106 : vector<16x64xf32>
    %108 = vector.extract_strided_slice %69 {offsets = [64, 0], sizes = [16, 64], strides = [1, 1]} : vector<128x64xf32> to vector<16x64xf32>
    %c32_i32_23 = arith.constant 32 : i32
    %109 = vector.broadcast %c32_i32_23 : i32 to vector<16x64xi32>
    %110 = arith.cmpi sge, %70, %109 : vector<16x64xi32>
    %c40_i32 = arith.constant 40 : i32
    %111 = vector.broadcast %c40_i32 : i32 to vector<16x64xi32>
    %112 = arith.cmpi slt, %70, %111 : vector<16x64xi32>
    %113 = arith.andi %110, %112 : vector<16x64xi1>
    %cst_24 = arith.constant 0.000000e+00 : f32
    %114 = vector.broadcast %cst_24 : f32 to vector<16x64xf32>
    %115 = arith.select %113, %108, %114 : vector<16x64xi1>, vector<16x64xf32>
    %116 = arith.addf %107, %115 : vector<16x64xf32>
    %117 = vector.extract_strided_slice %69 {offsets = [80, 0], sizes = [16, 64], strides = [1, 1]} : vector<128x64xf32> to vector<16x64xf32>
    %c40_i32_25 = arith.constant 40 : i32
    %118 = vector.broadcast %c40_i32_25 : i32 to vector<16x64xi32>
    %119 = arith.cmpi sge, %70, %118 : vector<16x64xi32>
    %c48_i32 = arith.constant 48 : i32
    %120 = vector.broadcast %c48_i32 : i32 to vector<16x64xi32>
    %121 = arith.cmpi slt, %70, %120 : vector<16x64xi32>
    %122 = arith.andi %119, %121 : vector<16x64xi1>
    %cst_26 = arith.constant 0.000000e+00 : f32
    %123 = vector.broadcast %cst_26 : f32 to vector<16x64xf32>
    %124 = arith.select %122, %117, %123 : vector<16x64xi1>, vector<16x64xf32>
    %125 = arith.addf %116, %124 : vector<16x64xf32>
    %126 = vector.extract_strided_slice %69 {offsets = [96, 0], sizes = [16, 64], strides = [1, 1]} : vector<128x64xf32> to vector<16x64xf32>
    %c48_i32_27 = arith.constant 48 : i32
    %127 = vector.broadcast %c48_i32_27 : i32 to vector<16x64xi32>
    %128 = arith.cmpi sge, %70, %127 : vector<16x64xi32>
    %c56_i32 = arith.constant 56 : i32
    %129 = vector.broadcast %c56_i32 : i32 to vector<16x64xi32>
    %130 = arith.cmpi slt, %70, %129 : vector<16x64xi32>
    %131 = arith.andi %128, %130 : vector<16x64xi1>
    %cst_28 = arith.constant 0.000000e+00 : f32
    %132 = vector.broadcast %cst_28 : f32 to vector<16x64xf32>
    %133 = arith.select %131, %126, %132 : vector<16x64xi1>, vector<16x64xf32>
    %134 = arith.addf %125, %133 : vector<16x64xf32>
    %135 = vector.extract_strided_slice %69 {offsets = [112, 0], sizes = [16, 64], strides = [1, 1]} : vector<128x64xf32> to vector<16x64xf32>
    %c56_i32_29 = arith.constant 56 : i32
    %136 = vector.broadcast %c56_i32_29 : i32 to vector<16x64xi32>
    %137 = arith.cmpi sge, %70, %136 : vector<16x64xi32>
    %c64_i32 = arith.constant 64 : i32
    %138 = vector.broadcast %c64_i32 : i32 to vector<16x64xi32>
    %139 = arith.cmpi slt, %70, %138 : vector<16x64xi32>
    %140 = arith.andi %137, %139 : vector<16x64xi1>
    %cst_30 = arith.constant 0.000000e+00 : f32
    %141 = vector.broadcast %cst_30 : f32 to vector<16x64xf32>
    %142 = arith.select %140, %135, %141 : vector<16x64xi1>, vector<16x64xf32>
    %143 = arith.addf %134, %142 : vector<16x64xf32>
    %cst_31 = arith.constant 0.000000e+00 : f32
    %144 = vector.broadcast %cst_31 : f32 to vector<16x64xf32>
    %145 = arith.cmpf ogt, %143, %144 : vector<16x64xf32>
    %cst_32 = arith.constant 0.000000e+00 : f32
    %146 = vector.broadcast %cst_32 : f32 to vector<16x64xf32>
    %147 = arith.minimumf %143, %146 : vector<16x64xf32>
    %148 = math.exp %147 : vector<16x64xf32>
    %cst_33 = arith.constant 1.000000e+00 : f32
    %149 = vector.broadcast %cst_33 : f32 to vector<16x64xf32>
    %150 = arith.subf %148, %149 : vector<16x64xf32>
    %151 = arith.select %145, %143, %150 : vector<16x64xi1>, vector<16x64xf32>
    %c0_34 = arith.constant 0 : index
    %c0_35 = arith.constant 0 : index
    %152 = vector.load %arg8[%c0_34, %c0_35] : memref<16x64xf32, #tpu.memory_space<vmem>>, vector<16x64xf32>
    tpu.vector_store %arg8[%c0_34, %c0_35], %151 {strides = array<i32>} : memref<16x64xf32, #tpu.memory_space<vmem>>, vector<16x64xf32>,
    %c0_36 = arith.constant 0 : index
    %c0_37 = arith.constant 0 : index
    %153 = vector.load %arg4[%c0_36, %c0_37] : memref<64x32xf32, #tpu.memory_space<vmem>>, vector<64x32xf32>
    %cst_38 = arith.constant dense<0.000000e+00> : vector<16x32xf32>
    %154 = tpu.matmul %151, %153, %cst_38 {dimension_numbers = #tpu.dot_dimension_numbers<[1], [0], [0], [1], [0, 0, 1, 1], [], []>} : vector<16x64xf32>, vector<64x32xf32>, vector<16x32xf32> -> vector<16x32xf32>
    %c0_39 = arith.constant 0 : index
    %c0_40 = arith.constant 0 : index
    %155 = vector.load %arg5[%c0_39, %c0_40] : memref<1x32xf32, #tpu.memory_space<vmem>>, vector<1x32xf32>
    %156 = vector.broadcast %155 : vector<1x32xf32> to vector<16x32xf32>
    %157 = arith.addf %154, %156 : vector<16x32xf32>
    %cst_41 = arith.constant 0.000000e+00 : f32
    %158 = vector.broadcast %cst_41 : f32 to vector<16x32xf32>
    %159 = arith.maximumf %157, %158 : vector<16x32xf32>
    %c0_42 = arith.constant 0 : index
    %c0_43 = arith.constant 0 : index
    %160 = vector.load %arg6[%c0_42, %c0_43] : memref<32x16xf32, #tpu.memory_space<vmem>>, vector<32x16xf32>
    %cst_44 = arith.constant dense<0.000000e+00> : vector<16x16xf32>
    %161 = tpu.matmul %159, %160, %cst_44 {dimension_numbers = #tpu.dot_dimension_numbers<[1], [0], [0], [1], [0, 0, 1, 1], [], []>} : vector<16x32xf32>, vector<32x16xf32>, vector<16x16xf32> -> vector<16x16xf32>
    %c0_45 = arith.constant 0 : index
    %c0_46 = arith.constant 0 : index
    %162 = vector.load %arg7[%c0_45, %c0_46] : memref<1x16xf32, #tpu.memory_space<vmem>>, vector<1x16xf32>
    %163 = vector.broadcast %162 : vector<1x16xf32> to vector<16x16xf32>
    %164 = arith.addf %161, %163 : vector<16x16xf32>
    %cst_47 = arith.constant 0.000000e+00 : f32
    %165 = vector.broadcast %cst_47 : f32 to vector<16x16xf32>
    %166 = arith.subf %165, %164 : vector<16x16xf32>
    %167 = math.exp %166 : vector<16x16xf32>
    %cst_48 = arith.constant 1.000000e+00 : f32
    %168 = vector.broadcast %cst_48 : f32 to vector<16x16xf32>
    %169 = arith.addf %168, %167 : vector<16x16xf32>
    %170 = tpu.reciprocal %169 {approx = true} : vector<16x16xf32> -> vector<16x16xf32>
    %c0_49 = arith.constant 0 : index
    %c0_50 = arith.constant 0 : index
    %171 = vector.load %arg9[%c0_49, %c0_50] : memref<16x16xf32, #tpu.memory_space<vmem>>, vector<16x16xf32>
    tpu.vector_store %arg9[%c0_49, %c0_50], %170 {strides = array<i32>} : memref<16x16xf32, #tpu.memory_space<vmem>>, vector<16x16xf32>,
    return
  }
}

</mosaic_0001>

<bundles_post_ra>
// kernel: tpu_custom_call.1
= control target key start
LH: loop header
LB: loop body
LE: loop exit
PB: predicated region body
PF: predicated region fallthrough
CT: control target
= control target key end

     0   :  { %15 = vsyncpa [#allocation3], 0  ;;  %vm41_vm0 = vcmask 261120   ;;  %v1352_v3 = vmov 0.0   ;;  %s1793_s0 = inlined_call_operand.vmem [shape: f32[16,32], index: 0, kind: input, shape index: {}]   ;;  %s1794_s1 = inlined_call_operand.vmem [shape: f32[16,16], index: 1, kind: input, shape index: {}]   ;;  %s1795_s2 = inlined_call_operand.vmem [shape: f32[32,72], index: 2, kind: input, shape index: {}]   ;;  %s1796_s3 = inlined_call_operand.vmem [shape: f32[8,32], index: 3, kind: input, shape index: {}]   ;;  %s1797_s4 = inlined_call_operand.vmem [shape: f32[64,32], index: 4, kind: input, shape index: {}]   ;;  %s1798_s5 = inlined_call_operand.vmem [shape: f32[1,32], index: 5, kind: input, shape index: {}]   ;;  %s1799_s6 = inlined_call_operand.vmem [shape: f32[32,16], index: 6, kind: input, shape index: {}]   ;;  %s1800_s7 = inlined_call_operand.vmem [shape: f32[1,16], index: 7, kind: input, shape index: {}]   ;;  %s1801_s8 = inlined_call_operand.hbm [shape: f32[16,64], index: 8, kind: output, shape index: {0}]   ;;  %s1802_s9 = inlined_call_operand.hbm [shape: f32[16,16], index: 9, kind: output, shape index: {1}]  }
   0x1   :  { %v40_v0 = vld [vmem:[%s1795_s2 + $0x18] sm:$0xff]  ;;  %v39_v1 = vld [vmem:[%s1795_s2 + $0x10] sm:$0xff]  ;;  %v33_v2 = vld [vmem:[%s1793_s0] sm:$0xff]  ;;  %1137 = vmatprep.subr.mxu1 %v1352_v3 }
   0x2   :  { %1126 = vmatprep.subr.mxu0 %v40_v0  ;;  %v38_v4 = vld [vmem:[%s1795_s2 + $0x8] sm:$0xff]  ;;  %1134 = vmatprep.mubr.msk.f32.mxu0 %vm41_vm0, %v33_v2 }
   0x3   :  { %1127 = vmatpush3.msra.mxu0 %v40_v0  ;;  %v34_v5 = vld [vmem:[%s1793_s0 + $0x8] sm:$0xff] }
   0x4   :  { %16 = vsyncpa [#allocation5], 0  ;;  %1128 = vmatprep.subr.mxu0 %v39_v1  ;;  %1138 = vmatpush3.xpose.msk.msra.mxu1 %vm41_vm0, %v34_v5  ;;  %v37_v6 = vld [vmem:[%s1795_s2] sm:$0xff]  ;;  %vm1353_vm1 = vmmov 0   ;;  %v1354_v7 = vmov 65   ;;  %v1355_v9 = vmov 64   ;;  %v207_v20 = vlaneseq }
   0x5   :  { %1129 = vmatpush3.msra.mxu0 %v39_v1  ;;  %1139 = vmatprep.subr.mxu1 %v1352_v3  ;;  %v123_v8 = vld [vmem:[%s1796_s3] sm:$0xff]  ;;  %v1356_v14 = vmov 66   ;;  %v1357_v15 = vmov 67   ;;  %v1358_v16 = vmov 68   ;;  %v1359_v17 = vmov 69   ;;  %v1452_v26 = vld [vmem:[%s1794_s1 + $0x8] sm:$0xff] }
   0x6   :  { %1130 = vmatprep.subr.mxu0 %v38_v4  ;;  %1141 = vmatprep.mubr.msk.f32.mxu1 %vm1353_vm1, %v1352_v3  ;;  %v1360_v18 = vmov 70   ;;  %v1361_v19 = vmov 71   ;;  %v1445_v21 = vshrl.u32 %v207_v20, 7  ;;  %vm360_vm3 = vcmp.gt.f32.partialorder %v1452_v26, 0.0  ;;  %v1468_v41 = vld [vmem:[%s1794_s1] sm:$0xff]  ;;  %s1362_s1 = smov [#allocation2]  }
   0x7   :  { %1131 = vmatpush3.msra.mxu0 %v38_v4  ;;  %1217 = vset.pattern.permute.xlu1 %v1354_v7  ;;  %vm377_vm4 = vcmask 130048   ;;  %vm359_vm7 = vcmp.gt.f32.partialorder %v1468_v41, 0.0 }
   0x8   :  { %1132 = vmatprep.subr.mxu0 %v37_v6  ;;  %1140 = vmatpush3.xpose.msk.msra.mxu1 %vm41_vm0, %v33_v2  ;;  %v209_v22 = vsub.s32 0, %v1445_v21  ;;  %v223_v29 = vsub.s32 1, %v1445_v21  ;;  %v237_v36 = vsub.s32 2, %v1445_v21  ;;  %v251_v38 = vsub.s32 3, %v1445_v21 }
   0x9   :  { %1133 = vmatpush3.msra.mxu0 %v37_v6  ;;  %1216 = vset.pattern.permute.xlu0 %v1355_v9  ;;  %v279_v49 = vsub.s32 5, %v1445_v21  ;;  %v265_v57 = vsub.s32 4, %v1445_v21 }
   0xa   :  { %1135 = vmatmul.mubr.msk.f32.vlgmr.msra.gmra.mxu0 %vm41_vm0, %v34_v5 }
   0xb   :  { %1142 = vmatmul.mubr.msk.f32.vlgmr.msra.gmra.mxu1 %vm41_vm0, %v123_v8 }
  0xca   :  { %v1136_v10 = vpop.f32.mrf.mxu0 }
  0xcb   :  { %218 = vperm.xlu1 %1217, %v1136_v10   ;;  %204 = vperm.xlu0 %1216, %v1136_v10   ;;  %v1442_v11 = vpop.f32.mrf.mxu1 }
  0xcc   :  { %1144 = vmatprep.subr.mxu0 %v1136_v10  ;;  %v114_v12 = vpop.f32.mrf.mxu0  ;;  %v210_v23 = vrot.slane %v1442_v11, %v209_v22  ;;  %v224_v35 = vrot.slane %v1442_v11, %v223_v29  ;;  %v238_v43 = vrot.slane %v1442_v11, %v237_v36  ;;  %v252_v47 = vrot.slane %v1442_v11, %v251_v38 }
  0xcd   :  { %1145 = vmatpush3.msra.mxu0 %v1136_v10  ;;  %v1143_v13 = vpop.f32.mrf.mxu1  ;;  %v280_v0 = vrot.slane %v1442_v11, %v279_v49  ;;  %v266_v5 = vrot.slane %v1442_v11, %v265_v57 }
  0xce   :  { %1146 = vmatprep.subr.mxu0 %v114_v12 }
  0xcf   :  { %1147 = vmatpush3.msra.mxu0 %v114_v12  ;;  %1218 = vset.pattern.permute.xlu1 %v1356_v14 }
  0xd0   :  { %1219 = vset.pattern.permute.xlu0 %v1357_v15  ;;  %232 = vperm.xlu1 %1218, %v1136_v10  }
  0xd1   :  { %246 = vperm.xlu0 %1219, %v1136_v10  }
  0xd4   :  { %1221 = vset.pattern.permute.xlu1 %v1354_v7 }
  0xd5   :  { %1220 = vset.pattern.permute.xlu0 %v1355_v9  ;;  %214 = vperm.xlu1 %1221, %v114_v12  }
  0xd6   :  { %199 = vperm.xlu0 %1220, %v114_v12  }
  0xd9   :  { %1222 = vset.pattern.permute.xlu1 %v1358_v16 }
  0xda   :  { %1223 = vset.pattern.permute.xlu0 %v1356_v14  ;;  %260 = vperm.xlu1 %1222, %v1136_v10  }
  0xdb   :  { %228 = vperm.xlu0 %1223, %v114_v12  }
  0xde   :  { %1224 = vset.pattern.permute.xlu1 %v1357_v15 }
  0xdf   :  { %1227 = vset.pattern.permute.xlu0 %v1359_v17  ;;  %242 = vperm.xlu1 %1224, %v114_v12  }
  0xe0   :  { %270 = vperm.xlu0 %1227, %v114_v12  }
  0xe3   :  { %1225 = vset.pattern.permute.xlu1 %v1358_v16 }
  0xe4   :  { %1228 = vset.pattern.permute.xlu0 %v1360_v18  ;;  %256 = vperm.xlu1 %1225, %v114_v12  }
  0xe5   :  { %288 = vperm.xlu0 %1228, %v1136_v10  }
  0xe8   :  { %1226 = vset.pattern.permute.xlu1 %v1359_v17  ;;  %v293_v17 = vsub.s32 6, %v1445_v21 }
  0xe9   :  { %274 = vperm.xlu1 %1226, %v1136_v10   ;;  %1231 = vset.pattern.permute.xlu0 %v1361_v19 }
  0xed   :  { %1229 = vset.pattern.permute.xlu1 %v1360_v18 }
  0xee   :  { %284 = vperm.xlu1 %1229, %v114_v12  }
  0xf2   :  { %1230 = vset.pattern.permute.xlu1 %v1361_v19 }
  0xf3   :  { %298 = vperm.xlu1 %1230, %v114_v12  }
  0xf7   :  { %302 = vperm.xlu1 %1230, %v1136_v10  }
 0x146   :  { %v219_v24 = vpop.permute.xlu1 %218  ;;  %v205_v25 = vpop.permute.xlu0 %204 }
 0x147   :  { %v212_v27 = vadd.f32 %v210_v23, %v205_v25  ;;  %v226_v42 = vadd.f32 %v224_v35, %v219_v24 }
 0x149   :  { %v328_v28 = vmul.f32 0.2, %v212_v27  ;;  %vm312_vm2 = vcmp.gt.f32.partialorder %v212_v27, 0.0  ;;  %v330_v50 = vmul.f32 0.2, %v226_v42  ;;  %vm314_vm8 = vcmp.gt.f32.partialorder %v226_v42, 0.0 }
 0x14b   :  { %v233_v30 = vpop.permute.xlu1 %232  ;;  %v344_v31 = vsel %vm312_vm2, %v212_v27, %v328_v28  ;;  %v346_v1 = vsel %vm314_vm8, %v226_v42, %v330_v50  ;;  %v307_v50 = vsub.s32 7, %v1445_v21 }
 0x14c   :  { %v247_v32 = vpop.permute.xlu0 %246  ;;  %v1458_v33 = vsel %vm360_vm3, %v344_v31, -1e+09  ;;  %v240_v51 = vadd.f32 %v238_v43, %v233_v30  ;;  %v1497_v12 = vsel %vm360_vm3, %v346_v1, -1e+09 }
 0x14d   :  { %v381_v34 = vsel %vm377_vm4, %v1458_v33, -inf  ;;  %v254_v62 = vadd.f32 %v252_v47, %v247_v32  ;;  %v294_v32 = vrot.slane %v1442_v11, %v293_v17 }
 0x14e   :  { %382 = vmax.xlane.f32.xlu1 %v381_v34  ;;  %v332_v61 = vmul.f32 0.2, %v240_v51  ;;  %vm316_vm10 = vcmp.gt.f32.partialorder %v240_v51, 0.0 }
 0x14f   :  { %v334_v13 = vmul.f32 0.2, %v254_v62  ;;  %vm318_vm12 = vcmp.gt.f32.partialorder %v254_v62, 0.0 }
 0x150   :  { %v215_v37 = vpop.permute.xlu1 %214  ;;  %v348_v15 = vsel %vm316_vm10, %v240_v51, %v332_v61 }
 0x151   :  { %v225_v39 = vadd.f32 %v224_v35, %v215_v37  ;;  %v200_v40 = vpop.permute.xlu0 %199  ;;  %v1510_v27 = vsel %vm360_vm3, %v348_v15, -1e+09  ;;  %v350_v30 = vsel %vm318_vm12, %v254_v62, %v334_v13 }
 0x152   :  { %v211_v44 = vadd.f32 %v210_v23, %v200_v40  ;;  %v387_v23 = vsel %vm377_vm4, %v1497_v12, -inf  ;;  %v393_v35 = vsel %vm377_vm4, %v1510_v27, -inf  ;;  %v1521_v40 = vsel %vm360_vm3, %v350_v30, -1e+09 }
 0x153   :  { %v329_v45 = vmul.f32 0.2, %v225_v39  ;;  %vm313_vm5 = vcmp.gt.f32.partialorder %v225_v39, 0.0 }
 0x154   :  { %v327_v46 = vmul.f32 0.2, %v211_v44  ;;  %vm311_vm6 = vcmp.gt.f32.partialorder %v211_v44, 0.0 }
 0x155   :  { %v261_v48 = vpop.permute.xlu1 %260  ;;  %v345_v54 = vsel %vm313_vm5, %v225_v39, %v329_v45 }
 0x156   :  { %v229_v52 = vpop.permute.xlu0 %228  ;;  %v343_v53 = vsel %vm311_vm6, %v211_v44, %v327_v46  ;;  %v1483_v60 = vsel %vm359_vm7, %v345_v54, -1e+09  ;;  %v268_v14 = vadd.f32 %v266_v5, %v261_v48 }
 0x157   :  { %v239_v55 = vadd.f32 %v238_v43, %v229_v52  ;;  %v1476_v56 = vsel %vm359_vm7, %v343_v53, -1e+09  ;;  %v384_v7 = vsel %vm377_vm4, %v1483_v60, -inf }
 0x158   :  { %v378_v58 = vsel %vm377_vm4, %v1476_v56, -inf  ;;  %v336_v28 = vmul.f32 0.2, %v268_v14  ;;  %vm320_vm15 = vcmp.gt.f32.partialorder %v268_v14, 0.0 }
 0x159   :  { %v331_v59 = vmul.f32 0.2, %v239_v55  ;;  %379 = vmax.xlane.f32.xlu0 %v378_v58  ;;  %vm315_vm9 = vcmp.gt.f32.partialorder %v239_v55, 0.0  ;;  %v308_v58 = vrot.slane %v1442_v11, %v307_v50 }
 0x15a   :  { %v243_v63 = vpop.permute.xlu1 %242  ;;  %v352_v44 = vsel %vm320_vm15, %v268_v14, %v336_v28 }
 0x15b   :  { %v253_v2 = vadd.f32 %v252_v47, %v243_v63  ;;  %v271_v3 = vpop.permute.xlu0 %270  ;;  %v347_v4 = vsel %vm315_vm9, %v239_v55, %v331_v59  ;;  %v399_v47 = vsel %vm377_vm4, %v1521_v40, -inf  ;;  %v1533_v49 = vsel %vm360_vm3, %v352_v44, -1e+09 }
 0x15c   :  { %v281_v6 = vadd.f32 %v280_v0, %v271_v3  ;;  %v1491_v8 = vsel %vm359_vm7, %v347_v4, -1e+09  ;;  %v405_v57 = vsel %vm377_vm4, %v1533_v49, -inf }
 0x15d   :  { %v333_v9 = vmul.f32 0.2, %v253_v2  ;;  %385 = vmax.xlane.f32.xlu0 %v384_v7  ;;  %v390_v10 = vsel %vm377_vm4, %v1491_v8, -inf  ;;  %vm317_vm11 = vcmp.gt.f32.partialorder %v253_v2, 0.0 }
 0x15e   :  { %391 = vmax.xlane.f32.xlu1 %v390_v10  ;;  %v337_v19 = vmul.f32 0.2, %v281_v6  ;;  %vm321_vm13 = vcmp.gt.f32.partialorder %v281_v6, 0.0 }
 0x15f   :  { %v257_v16 = vpop.permute.xlu1 %256  ;;  %v349_v18 = vsel %vm317_vm11, %v253_v2, %v333_v9 }
 0x160   :  { %v267_v22 = vadd.f32 %v266_v5, %v257_v16  ;;  %v1504_v24 = vsel %vm359_vm7, %v349_v18, -1e+09  ;;  %v289_v31 = vpop.permute.xlu0 %288  ;;  %v353_v37 = vsel %vm321_vm13, %v281_v6, %v337_v19 }
 0x161   :  { %388 = vmax.xlane.f32.xlu0 %v387_v23  ;;  %v396_v25 = vsel %vm377_vm4, %v1504_v24, -inf  ;;  %v296_v42 = vadd.f32 %v294_v32, %v289_v31  ;;  %v1527_v46 = vsel %vm359_vm7, %v353_v37, -1e+09 }
 0x162   :  { %v335_v29 = vmul.f32 0.2, %v267_v22  ;;  %397 = vmax.xlane.f32.xlu1 %v396_v25  ;;  %vm319_vm14 = vcmp.gt.f32.partialorder %v267_v22, 0.0  ;;  %v408_v53 = vsel %vm377_vm4, %v1527_v46, -inf }
 0x163   :  { %v340_v51 = vmul.f32 0.2, %v296_v42  ;;  %vm324_vm2 = vcmp.gt.f32.partialorder %v296_v42, 0.0 }
 0x164   :  { %v275_v34 = vpop.permute.xlu1 %274  ;;  %v351_v36 = vsel %vm319_vm14, %v267_v22, %v335_v29 }
 0x165   :  { %v282_v38 = vadd.f32 %v280_v0, %v275_v34  ;;  %394 = vmax.xlane.f32.xlu0 %v393_v35  ;;  %v1517_v39 = vsel %vm359_vm7, %v351_v36, -1e+09  ;;  %v356_v62 = vsel %vm324_vm2, %v296_v42, %v340_v51 }
 0x166   :  { %v402_v43 = vsel %vm377_vm4, %v1517_v39, -inf  ;;  %v1555_v11 = vsel %vm360_vm3, %v356_v62, -1e+09 }
 0x167   :  { %v338_v45 = vmul.f32 0.2, %v282_v38  ;;  %403 = vmax.xlane.f32.xlu1 %v402_v43  ;;  %vm322_vm1 = vcmp.gt.f32.partialorder %v282_v38, 0.0  ;;  %v417_v7 = vsel %vm377_vm4, %v1555_v11, -inf }
 0x169   :  { %400 = vmax.xlane.f32.xlu0 %v399_v47  ;;  %v285_v48 = vpop.permute.xlu1 %284  ;;  %v354_v54 = vsel %vm322_vm1, %v282_v38, %v338_v45 }
 0x16a   :  { %v295_v52 = vadd.f32 %v294_v32, %v285_v48  ;;  %v1543_v59 = vsel %vm360_vm3, %v354_v54, -1e+09 }
 0x16b   :  { %409 = vmax.xlane.f32.xlu1 %v408_v53  ;;  %v411_v1 = vsel %vm377_vm4, %v1543_v59, -inf }
 0x16c   :  { %v339_v55 = vmul.f32 0.2, %v295_v52  ;;  %vm323_vm5 = vcmp.gt.f32.partialorder %v295_v52, 0.0 }
 0x16d   :  { %406 = vmax.xlane.f32.xlu0 %v405_v57 }
 0x16e   :  { %v299_v21 = vpop.permute.xlu1 %298  ;;  %v355_v61 = vsel %vm323_vm5, %v295_v52, %v339_v55 }
 0x16f   :  { %v309_v63 = vadd.f32 %v308_v58, %v299_v21  ;;  %v1547_v0 = vsel %vm359_vm7, %v355_v61, -1e+09 }
 0x170   :  { %v414_v2 = vsel %vm377_vm4, %v1547_v0, -inf }
 0x171   :  { %v341_v3 = vmul.f32 0.2, %v309_v63  ;;  %412 = vmax.xlane.f32.xlu0 %v411_v1  ;;  %415 = vmax.xlane.f32.xlu1 %v414_v2  ;;  %vm325_vm6 = vcmp.gt.f32.partialorder %v309_v63, 0.0 }
 0x172   :  { %v303_v4 = vpop.permute.xlu1 %302 }
 0x173   :  { %v310_v5 = vadd.f32 %v308_v58, %v303_v4  ;;  %v357_v6 = vsel %vm325_vm6, %v309_v63, %v341_v3 }
 0x174   :  { %v1561_v9 = vsel %vm359_vm7, %v357_v6, -1e+09 }
 0x175   :  { %v342_v10 = vmul.f32 0.2, %v310_v5  ;;  %418 = vmax.xlane.f32.xlu0 %v417_v7  ;;  %v420_v13 = vsel %vm377_vm4, %v1561_v9, -inf  ;;  %vm326_vm8 = vcmp.gt.f32.partialorder %v310_v5, 0.0 }
 0x176   :  { %421 = vmax.xlane.f32.xlu1 %v420_v13 }
 0x177   :  { %v358_v14 = vsel %vm326_vm8, %v310_v5, %v342_v10 }
 0x178   :  { %v1567_v15 = vsel %vm360_vm3, %v358_v14, -1e+09 }
 0x179   :  { %v423_v16 = vsel %vm377_vm4, %v1567_v15, -inf }
 0x17a   :  { %424 = vmax.xlane.f32.xlu0 %v423_v16 }
 0x1d7   :  { %v383_v17 = vpop.xlane.xlu1 %382 }
 0x1d8   :  { %v427_v41 = vsub.f32 %v1458_v33, %v383_v17 }
 0x1da   :  { %v444_v18 = vmul.f32 1.442695, %v427_v41 }
 0x1dc   :  { %1232 = vpow2.f32 %v444_v18 }
 0x1e2   :  { %v380_v19 = vpop.xlane.xlu0 %379 }
 0x1e3   :  { %v426_v22 = vsub.f32 %v1476_v56, %v380_v19 }
 0x1e5   :  { %v442_v23 = vmul.f32 1.442695, %v426_v22 }
 0x1e6   :  { %v386_v25 = vpop.xlane.xlu0 %385 }
 0x1e7   :  { %1234 = vpow2.f32 %v442_v23  ;;  %v428_v28 = vsub.f32 %v1483_v60, %v386_v25  ;;  %v392_v26 = vpop.xlane.xlu1 %391 }
 0x1e8   :  { %v430_v29 = vsub.f32 %v1491_v8, %v392_v26 }
 0x1e9   :  { %v1575_v30 = vpop.eup %1232  ;;  %v446_v31 = vmul.f32 1.442695, %v428_v28 }
 0x1ea   :  { %v450_v32 = vmul.f32 1.442695, %v430_v29  ;;  %v389_v34 = vpop.xlane.xlu0 %388  ;;  %v477_v33 = vsel %vm377_vm4, %v1575_v30, 0.0 }
 0x1eb   :  { %1236 = vpow2.f32 %v446_v31  ;;  %v429_v35 = vsub.f32 %v1497_v12, %v389_v34  ;;  %v398_v56 = vpop.xlane.xlu1 %397  ;;  %478 = vadd.xlane.f32.xlu0 %v477_v33 }
 0x1ec   :  { %v432_v36 = vsub.f32 %v1504_v24, %v398_v56  ;;  %1238 = vpow2.f32 %v450_v32 }
 0x1ed   :  { %v448_v60 = vmul.f32 1.442695, %v429_v35 }
 0x1ee   :  { %v454_v37 = vmul.f32 1.442695, %v432_v36  ;;  %v395_v38 = vpop.xlane.xlu0 %394 }
 0x1ef   :  { %1240 = vpow2.f32 %v448_v60  ;;  %v431_v8 = vsub.f32 %v1510_v27, %v395_v38 }
 0x1f0   :  { %v404_v42 = vpop.xlane.xlu1 %403  ;;  %1242 = vpow2.f32 %v454_v37 }
 0x1f1   :  { %v452_v43 = vmul.f32 1.442695, %v431_v8  ;;  %v434_v44 = vsub.f32 %v1517_v39, %v404_v42 }
 0x1f2   :  { %v401_v45 = vpop.xlane.xlu0 %400 }
 0x1f3   :  { %1244 = vpow2.f32 %v452_v43  ;;  %v458_v47 = vmul.f32 1.442695, %v434_v44  ;;  %v433_v12 = vsub.f32 %v1521_v40, %v401_v45 }
 0x1f4   :  { %v1584_v48 = vpop.eup %1234  ;;  %v410_v24 = vpop.xlane.xlu1 %409 }
 0x1f5   :  { %1246 = vpow2.f32 %v458_v47  ;;  %v456_v50 = vmul.f32 1.442695, %v433_v12  ;;  %v436_v51 = vsub.f32 %v1527_v46, %v410_v24  ;;  %v474_v27 = vsel %vm377_vm4, %v1584_v48, 0.0 }
 0x1f6   :  { %475 = vadd.xlane.f32.xlu1 %v474_v27  ;;  %v407_v52 = vpop.xlane.xlu0 %406 }
 0x1f7   :  { %1248 = vpow2.f32 %v456_v50  ;;  %v462_v53 = vmul.f32 1.442695, %v436_v51  ;;  %v435_v39 = vsub.f32 %v1533_v49, %v407_v52 }
 0x1f8   :  { %v1590_v54 = vpop.eup %1236 }
 0x1f9   :  { %1250 = vpow2.f32 %v462_v53  ;;  %v460_v40 = vmul.f32 1.442695, %v435_v39  ;;  %v480_v55 = vsel %vm377_vm4, %v1590_v54, 0.0  ;;  %v1594_v57 = vpop.eup %1238 }
 0x1fa   :  { %481 = vadd.xlane.f32.xlu1 %v480_v55  ;;  %v413_v46 = vpop.xlane.xlu0 %412  ;;  %v416_v58 = vpop.xlane.xlu1 %415  ;;  %v486_v1 = vsel %vm377_vm4, %v1594_v57, 0.0 }
 0x1fb   :  { %1252 = vpow2.f32 %v460_v40  ;;  %v437_v21 = vsub.f32 %v1543_v59, %v413_v46  ;;  %v438_v61 = vsub.f32 %v1547_v0, %v416_v58 }
 0x1fc   :  { %v1598_v62 = vpop.eup %1240 }
 0x1fd   :  { %v464_v49 = vmul.f32 1.442695, %v437_v21  ;;  %v466_v63 = vmul.f32 1.442695, %v438_v61  ;;  %v483_v2 = vsel %vm377_vm4, %v1598_v62, 0.0  ;;  %v1604_v3 = vpop.eup %1242 }
 0x1fe   :  { %487 = vadd.xlane.f32.xlu1 %v486_v1  ;;  %484 = vadd.xlane.f32.xlu0 %v483_v2  ;;  %v419_v4 = vpop.xlane.xlu0 %418  ;;  %v492_v10 = vsel %vm377_vm4, %v1604_v3, 0.0 }
 0x1ff   :  { %1254 = vpow2.f32 %v464_v49  ;;  %v439_v59 = vsub.f32 %v1555_v11, %v419_v4  ;;  %v422_v5 = vpop.xlane.xlu1 %421 }
 0x200   :  { %v1607_v0 = vpop.eup %1244  ;;  %1256 = vpow2.f32 %v466_v63  ;;  %v440_v6 = vsub.f32 %v1561_v9, %v422_v5 }
 0x201   :  { %v468_v7 = vmul.f32 1.442695, %v439_v59  ;;  %v489_v13 = vsel %vm377_vm4, %v1607_v0, 0.0 }
 0x202   :  { %v1614_v14 = vpop.eup %1246  ;;  %v470_v16 = vmul.f32 1.442695, %v440_v6  ;;  %493 = vadd.xlane.f32.xlu1 %v492_v10  ;;  %490 = vadd.xlane.f32.xlu0 %v489_v13 }
 0x203   :  { %1258 = vpow2.f32 %v468_v7  ;;  %v425_v11 = vpop.xlane.xlu0 %424  ;;  %v498_v17 = vsel %vm377_vm4, %v1614_v14, 0.0 }
 0x204   :  { %v1618_v41 = vpop.eup %1248  ;;  %1260 = vpow2.f32 %v470_v16  ;;  %v441_v9 = vsub.f32 %v1567_v15, %v425_v11 }
 0x205   :  { %v495_v18 = vsel %vm377_vm4, %v1618_v41, 0.0 }
 0x206   :  { %v1623_v19 = vpop.eup %1250  ;;  %v472_v22 = vmul.f32 1.442695, %v441_v9  ;;  %499 = vadd.xlane.f32.xlu1 %v498_v17  ;;  %496 = vadd.xlane.f32.xlu0 %v495_v18 }
 0x207   :  { %v504_v23 = vsel %vm377_vm4, %v1623_v19, 0.0 }
 0x208   :  { %v1627_v25 = vpop.eup %1252  ;;  %1262 = vpow2.f32 %v472_v22  ;;  %v826_v22 = vld [vmem:[%s1797_s4 + $0x30] sm:$0xff] }
 0x209   :  { %v501_v28 = vsel %vm377_vm4, %v1627_v25, 0.0 }
 0x20a   :  { %505 = vadd.xlane.f32.xlu1 %v504_v23  ;;  %502 = vadd.xlane.f32.xlu0 %v501_v28  ;;  %v825_v23 = vld [vmem:[%s1797_s4 + $0x28] sm:$0xff]  ;;  %v823_v28 = vld [vmem:[%s1797_s4 + $0x18] sm:$0xff] }
 0x20c   :  { %v1631_v15 = vpop.eup %1254 }
 0x20d   :  { %v1633_v26 = vpop.eup %1256  ;;  %v507_v29 = vsel %vm377_vm4, %v1631_v15, 0.0 }
 0x20e   :  { %508 = vadd.xlane.f32.xlu0 %v507_v29  ;;  %v510_v31 = vsel %vm377_vm4, %v1633_v26, 0.0  ;;  %v820_v29 = vld [vmem:[%s1797_s4] sm:$0xff] }
 0x20f   :  { %511 = vadd.xlane.f32.xlu1 %v510_v31 }
 0x210   :  { %v1639_v32 = vpop.eup %1258 }
 0x211   :  { %v1641_v34 = vpop.eup %1260  ;;  %v513_v33 = vsel %vm377_vm4, %v1639_v32, 0.0 }
 0x212   :  { %514 = vadd.xlane.f32.xlu0 %v513_v33  ;;  %v516_v35 = vsel %vm377_vm4, %v1641_v34, 0.0 }
 0x213   :  { %517 = vadd.xlane.f32.xlu1 %v516_v35  ;;  %v748_v35 = vand.u32 127, %v207_v20 }
 0x215   :  { %v1647_v56 = vpop.eup %1262  ;;  %vm756_vm3 = vcmp.ge.s32.totalorder %v748_v35, 8  ;;  %vm757_vm7 = vcmp.lt.s32.totalorder %v748_v35, 16  ;;  %vm763_vm9 = vcmp.ge.s32.totalorder %v748_v35, 16  ;;  %vm764_vm10 = vcmp.lt.s32.totalorder %v748_v35, 24 }
 0x216   :  { %v519_v36 = vsel %vm377_vm4, %v1647_v56, 0.0  ;;  %vm1708_vm11 = vmand %vm756_vm3, %vm757_vm7  ;;  %vm770_vm12 = vcmp.ge.s32.totalorder %v748_v35, 24  ;;  %vm771_vm13 = vcmp.lt.s32.totalorder %v748_v35, 32  ;;  %vm750_vm14 = vcmp.lt.s32.totalorder %v748_v35, 8 }
 0x217   :  { %520 = vadd.xlane.f32.xlu0 %v519_v36  ;;  %vm1712_vm15 = vmand %vm763_vm9, %vm764_vm10  ;;  %vm777_vm1 = vcmp.ge.s32.totalorder %v748_v35, 32  ;;  %vm778_vm2 = vcmp.lt.s32.totalorder %v748_v35, 40  ;;  %vm784_vm6 = vcmp.ge.s32.totalorder %v748_v35, 40  ;;  %vm785_vm8 = vcmp.lt.s32.totalorder %v748_v35, 48 }
 0x218   :  { %vm1718_vm5 = vmand %vm770_vm12, %vm771_vm13  ;;  %vm791_vm7 = vcmp.ge.s32.totalorder %v748_v35, 48  ;;  %vm792_vm9 = vcmp.lt.s32.totalorder %v748_v35, 56  ;;  %vm798_vm12 = vcmp.ge.s32.totalorder %v748_v35, 56  ;;  %vm799_vm13 = vcmp.lt.s32.totalorder %v748_v35, 64 }
 0x219   :  { %vm1727_vm3 = vmand %vm777_vm1, %vm778_vm2 }
 0x21a   :  { %vm1737_vm10 = vmand %vm784_vm6, %vm785_vm8 }
 0x274   :  { %v479_v60 = vpop.xlane.xlu0 %478 }
 0x275   :  { %1264 = vrcp.f32 %v479_v60 }
 0x27f   :  { %v476_v37 = vpop.xlane.xlu1 %475 }
 0x280   :  { %1266 = vrcp.f32 %v476_v37 }
 0x282   :  { %v1265_v45 = vpop.eup %1264 }
 0x283   :  { %v482_v38 = vpop.xlane.xlu1 %481  ;;  %v539_v51 = vmul.f32 %v1265_v45, %v1575_v30 }
 0x284   :  { %1268 = vrcp.f32 %v482_v38 }
 0x287   :  { %v488_v8 = vpop.xlane.xlu1 %487  ;;  %v485_v42 = vpop.xlane.xlu0 %484 }
 0x288   :  { %1270 = vrcp.f32 %v488_v8 }
 0x289   :  { %1272 = vrcp.f32 %v485_v42 }
 0x28b   :  { %v494_v43 = vpop.xlane.xlu1 %493  ;;  %v491_v44 = vpop.xlane.xlu0 %490 }
 0x28c   :  { %1274 = vrcp.f32 %v494_v43 }
 0x28d   :  { %v1267_v47 = vpop.eup %1266  ;;  %1276 = vrcp.f32 %v491_v44 }
 0x28e   :  { %v538_v12 = vmul.f32 %v1267_v47, %v1584_v48 }
 0x28f   :  { %v500_v24 = vpop.xlane.xlu1 %499  ;;  %v497_v50 = vpop.xlane.xlu0 %496 }
 0x290   :  { %1278 = vrcp.f32 %v500_v24  ;;  %1148 = vmatprep.mubr.msk.f32.mxu0 %vm377_vm4, %v538_v12 }
 0x291   :  { %v1269_v27 = vpop.eup %1268  ;;  %1280 = vrcp.f32 %v497_v50  ;;  %1149 = vmatmul.mubr.msk.f32.vlgmr.msra.gmra.mxu0 %vm377_vm4, %v539_v51 }
 0x292   :  { %v540_v52 = vmul.f32 %v1269_v27, %v1590_v54 }
 0x293   :  { %v506_v53 = vpop.xlane.xlu1 %505  ;;  %v503_v39 = vpop.xlane.xlu0 %502 }
 0x294   :  { %1282 = vrcp.f32 %v506_v53  ;;  %1151 = vmatprep.mubr.msk.f32.mxu0 %vm377_vm4, %v540_v52 }
 0x295   :  { %v1271_v40 = vpop.eup %1270  ;;  %1284 = vrcp.f32 %v503_v39 }
 0x296   :  { %v1273_v48 = vpop.eup %1272  ;;  %v542_v55 = vmul.f32 %v1271_v40, %v1594_v57 }
 0x297   :  { %v509_v30 = vpop.xlane.xlu0 %508  ;;  %v541_v46 = vmul.f32 %v1273_v48, %v1598_v62 }
 0x298   :  { %1286 = vrcp.f32 %v509_v30  ;;  %v512_v58 = vpop.xlane.xlu1 %511 }
 0x299   :  { %v1275_v21 = vpop.eup %1274  ;;  %1288 = vrcp.f32 %v512_v58  ;;  %1152 = vmatmul.mubr.msk.f32.gmra.mxu0 %vm377_vm4, %v541_v46 }
 0x29a   :  { %v1277_v54 = vpop.eup %1276  ;;  %1154 = vmatprep.mubr.msk.f32.mxu0 %vm377_vm4, %v542_v55  ;;  %v544_v61 = vmul.f32 %v1275_v21, %v1604_v3 }
 0x29b   :  { %v515_v49 = vpop.xlane.xlu0 %514  ;;  %v543_v63 = vmul.f32 %v1277_v54, %v1607_v0 }
 0x29c   :  { %1290 = vrcp.f32 %v515_v49  ;;  %v518_v1 = vpop.xlane.xlu1 %517 }
 0x29d   :  { %v1279_v57 = vpop.eup %1278  ;;  %1155 = vmatmul.mubr.msk.f32.gmra.mxu0 %vm377_vm4, %v543_v63  ;;  %1292 = vrcp.f32 %v518_v1 }
 0x29e   :  { %v1281_v62 = vpop.eup %1280  ;;  %1157 = vmatprep.mubr.msk.f32.mxu0 %vm377_vm4, %v544_v61  ;;  %v546_v2 = vmul.f32 %v1279_v57, %v1614_v14 }
 0x29f   :  { %v545_v4 = vmul.f32 %v1281_v62, %v1618_v41 }
 0x2a0   :  { %v521_v59 = vpop.xlane.xlu0 %520 }
 0x2a1   :  { %v1283_v5 = vpop.eup %1282  ;;  %1158 = vmatmul.mubr.msk.f32.gmra.mxu0 %vm377_vm4, %v545_v4  ;;  %1294 = vrcp.f32 %v521_v59 }
 0x2a2   :  { %v1285_v3 = vpop.eup %1284  ;;  %1160 = vmatprep.mubr.msk.f32.mxu0 %vm377_vm4, %v546_v2  ;;  %v548_v0 = vmul.f32 %v1283_v5, %v1623_v19  ;;  %v827_v19 = vld [vmem:[%s1797_s4 + $0x38] sm:$0xff] }
 0x2a3   :  { %v547_v6 = vmul.f32 %v1285_v3, %v1627_v25  ;;  %1172 = vmatprep.subr.mxu1 %v827_v19  ;;  %v824_v25 = vld [vmem:[%s1797_s4 + $0x20] sm:$0xff] }
 0x2a4   :  { %1173 = vmatpush3.msra.mxu1 %v827_v19 }
 0x2a5   :  { %v1287_v7 = vpop.eup %1286  ;;  %1161 = vmatmul.mubr.msk.f32.gmra.mxu0 %vm377_vm4, %v547_v6  ;;  %1174 = vmatprep.subr.mxu1 %v826_v22 }
 0x2a6   :  { %v1289_v10 = vpop.eup %1288  ;;  %1163 = vmatprep.mubr.msk.f32.mxu0 %vm377_vm4, %v548_v0  ;;  %v549_v13 = vmul.f32 %v1287_v7, %v1631_v15  ;;  %1175 = vmatpush3.msra.mxu1 %v826_v22  ;;  %v822_v15 = vld [vmem:[%s1797_s4 + $0x10] sm:$0xff] }
 0x2a7   :  { %v550_v14 = vmul.f32 %v1289_v10, %v1633_v26  ;;  %1176 = vmatprep.subr.mxu1 %v825_v23  ;;  %v821_v26 = vld [vmem:[%s1797_s4 + $0x8] sm:$0xff] }
 0x2a8   :  { %1177 = vmatpush3.msra.mxu1 %v825_v23 }
 0x2a9   :  { %v1291_v16 = vpop.eup %1290  ;;  %1164 = vmatmul.mubr.msk.f32.gmra.mxu0 %vm377_vm4, %v549_v13  ;;  %1178 = vmatprep.subr.mxu1 %v824_v25 }
 0x2aa   :  { %v1293_v11 = vpop.eup %1292  ;;  %1166 = vmatprep.mubr.msk.f32.mxu0 %vm377_vm4, %v550_v14  ;;  %v551_v17 = vmul.f32 %v1291_v16, %v1639_v32  ;;  %1179 = vmatpush3.msra.mxu1 %v824_v25 }
 0x2ab   :  { %v552_v41 = vmul.f32 %v1293_v11, %v1641_v34  ;;  %1180 = vmatprep.subr.mxu1 %v823_v28 }
 0x2ac   :  { %1181 = vmatpush3.msra.mxu1 %v823_v28 }
 0x2ad   :  { %1167 = vmatmul.mubr.msk.f32.gmra.mxu0 %vm377_vm4, %v551_v17  ;;  %1182 = vmatprep.subr.mxu1 %v822_v15 }
 0x2ae   :  { %v1295_v9 = vpop.eup %1294  ;;  %1169 = vmatprep.mubr.msk.f32.mxu0 %vm377_vm4, %v552_v41  ;;  %1183 = vmatpush3.msra.mxu1 %v822_v15 }
 0x2af   :  { %v553_v18 = vmul.f32 %v1295_v9, %v1647_v56  ;;  %1184 = vmatprep.subr.mxu1 %v821_v26 }
 0x2b0   :  { %1185 = vmatpush3.msra.mxu1 %v821_v26 }
 0x2b1   :  { %1170 = vmatmul.mubr.msk.f32.gmra.mxu0 %vm377_vm4, %v553_v18  ;;  %1186 = vmatprep.subr.mxu1 %v820_v29 }
 0x2b2   :  { %1187 = vmatpush3.msra.mxu1 %v820_v29  ;;  %v921_v29 = vld [vmem:[%s1799_s6 + $0x18] sm:$0xff] }
 0x2b3   :  { %1191 = vmatprep.subr.mxu1 %v921_v29 }
 0x351   :  { %v1150_v31 = vpop.f32.mrf.mxu0 }
 0x352   :  { %v753_v44 = vsel %vm750_vm14, %v1150_v31, 0.0  ;;  %v920_v31 = vld [vmem:[%s1799_s6 + $0x10] sm:$0xff] }
 0x353   :  { %v668_v32 = vpop.f32.mrf.mxu0 }
 0x354   :  { %v752_v51 = vsel %vm750_vm14, %v668_v32, 0.0  ;;  %vm800_vm14 = vmand %vm798_vm12, %vm799_vm13  ;;  %v919_v32 = vld [vmem:[%s1799_s6 + $0x8] sm:$0xff] }
 0x359   :  { %v1153_v34 = vpop.f32.mrf.mxu0 }
 0x35a   :  { %v760_v20 = vsel %vm1708_vm11, %v1153_v34, 0.0  ;;  %v918_v34 = vld [vmem:[%s1799_s6] sm:$0xff]  ;;  %s1027_s6 = sshll.u32 %s1362_s1, 4  ;;  %s1028_s6 = int_to_ptr.vmem [resolvable:$true] %s1027_s6 }
 0x35b   :  { %v678_v33 = vpop.f32.mrf.mxu0  ;;  %v762_v12 = vadd.f32 %v760_v20, %v753_v44  ;;  %s1308_s24 = scalar_lea.vmem %s1028_s6, 256  ;;  %p1313_p1 = scmp.lt.s32.totalorder %s1028_s6, %s1028_s6 }
 0x35c   :  { %v759_v45 = vsel %vm1708_vm11, %v678_v33, 0.0  ;;  %vm1745_vm11 = vmand %vm791_vm7, %vm792_vm9  ;;  %v1077_v33 = vld [vmem:[%s1798_s5] ss:$0 sm:$0xff]  ;;  %p1309_p0 = scmp.ne.s32.totalorder %s1028_s6, %s1308_s24  ;;  %p1314_p2 = scmp.lt.s32.totalorder %s1308_s24, %s1308_s24 }
 0x35d   :  { %v1156_v56 = vpop.f32.mrf.mxu0  ;;  %v761_v53 = vadd.f32 %v759_v45, %v752_v51 }
 0x35e   :  { %v767_v47 = vsel %vm1712_vm15, %v1156_v56, 0.0  ;;  %p1315_p3 = por %p1314_p2, %p1313_p1 }
 0x35f   :  { %v688_v36 = vpop.f32.mrf.mxu0  ;;  %v769_v39 = vadd.f32 %v767_v47, %v762_v12 }
 0x360   :  { %v766_v27 = vsel %vm1712_vm15, %v688_v36, 0.0  ;;  %vm817_vm15 = vcmask 523264   ;;  %p1316_p4 = pnand %p1315_p3, %p1309_p0 }
 0x361   :  { %v1159_v37 = vpop.f32.mrf.mxu0  ;;  %v768_v46 = vadd.f32 %v766_v27, %v761_v53 }
 0x362   :  { %v774_v52 = vsel %vm1718_vm5, %v1159_v37, 0.0 }
 0x363   :  { %v698_v8 = vpop.f32.mrf.mxu0  ;;  %v776_v58 = vadd.f32 %v774_v52, %v769_v39 }
 0x364   :  { %v773_v55 = vsel %vm1718_vm5, %v698_v8, 0.0 }
 0x365   :  { %v1162_v43 = vpop.f32.mrf.mxu0  ;;  %v775_v63 = vadd.f32 %v773_v55, %v768_v46 }
 0x366   :  { %v781_v30 = vsel %vm1727_vm3, %v1162_v43, 0.0 }
 0x367   :  { %v708_v50 = vpop.f32.mrf.mxu0  ;;  %v783_v1 = vadd.f32 %v781_v30, %v776_v58 }
 0x368   :  { %v780_v61 = vsel %vm1727_vm3, %v708_v50, 0.0 }
 0x369   :  { %v1165_v40 = vpop.f32.mrf.mxu0  ;;  %v782_v4 = vadd.f32 %v780_v61, %v775_v63 }
 0x36a   :  { %v788_v49 = vsel %vm1737_vm10, %v1165_v40, 0.0 }
 0x36b   :  { %v718_v21 = vpop.f32.mrf.mxu0  ;;  %v790_v59 = vadd.f32 %v788_v49, %v783_v1 }
 0x36c   :  { %v787_v62 = vsel %vm1737_vm10, %v718_v21, 0.0 }
 0x36d   :  { %v1168_v57 = vpop.f32.mrf.mxu0  ;;  %v789_v0 = vadd.f32 %v787_v62, %v782_v4 }
 0x36e   :  { %v795_v2 = vsel %vm1745_vm11, %v1168_v57, 0.0 }
 0x36f   :  { %v728_v5 = vpop.f32.mrf.mxu0  ;;  %v797_v6 = vadd.f32 %v795_v2, %v790_v59 }
 0x370   :  { %v794_v3 = vsel %vm1745_vm11, %v728_v5, 0.0 }
 0x371   :  { %v1171_v7 = vpop.f32.mrf.mxu0  ;;  %v796_v13 = vadd.f32 %v794_v3, %v789_v0 }
 0x372   :  { %v802_v10 = vsel %vm800_vm14, %v1171_v7, 0.0 }
 0x373   :  { %v804_v14 = vadd.f32 %v802_v10, %v797_v6  ;;  %v738_v16 = vpop.f32.mrf.mxu0 }
 0x374   :  { %v801_v11 = vsel %vm800_vm14, %v738_v16, 0.0 }
 0x375   :  { %v808_v17 = vmin.f32 %v804_v14, 0.0  ;;  %v803_v41 = vadd.f32 %v801_v11, %v796_v13  ;;  %vm806_vm1 = vcmp.gt.f32.partialorder %v804_v14, 0.0 }
 0x377   :  { %v811_v9 = vmul.f32 1.442695, %v808_v17  ;;  %v807_v18 = vmin.f32 %v803_v41, 0.0  ;;  %vm805_vm2 = vcmp.gt.f32.partialorder %v803_v41, 0.0 }
 0x379   :  { %1296 = vpow2.f32 %v811_v9  ;;  %v809_v19 = vmul.f32 1.442695, %v807_v18 }
 0x37b   :  { %1298 = vpow2.f32 %v809_v19 }
 0x386   :  { %v1297_v22 = vpop.eup %1296 }
 0x387   :  { %v1076_v23 = vadd.f32 -1.0, %v1297_v22 }
 0x388   :  { %v1299_v25 = vpop.eup %1298 }
 0x389   :  { %v1075_v28 = vadd.f32 -1.0, %v1299_v25  ;;  %v816_v15 = vsel %vm806_vm1, %v804_v14, %v1076_v23 }
 0x38a   :  { %819 = vst.msk [vmem:[#allocation2 + $0x8] sm:$0xff] %vm817_vm15, %v816_v15 }
 0x38b   :  { %v815_v26 = vsel %vm805_vm2, %v803_v41, %v1075_v28 }
 0x38c   :  { %818 = vst.msk [vmem:[#allocation2] sm:$0xff] %vm817_vm15, %v815_v26  ;;  %1188 = vmatprep.mubr.msk.f32.mxu1 %vm817_vm15, %v815_v26 }
 0x38d   :  { %1189 = vmatmul.mubr.msk.f32.vlgmr.msra.gmra.mxu1 %vm817_vm15, %v816_v15 }
 0x38e   :  { %1192 = vmatpush3.msra.mxu1 %v921_v29 }
 0x38f   :  { %1193 = vmatprep.subr.mxu1 %v920_v31 }
 0x390   :  { %1194 = vmatpush3.msra.mxu1 %v920_v31 }
 0x391   :  { %1195 = vmatprep.subr.mxu1 %v919_v32 }
 0x392   :  { %1196 = vmatpush3.msra.mxu1 %v919_v32 }
 0x393   :  { %1197 = vmatprep.subr.mxu1 %v918_v34 }
 0x394   :  { %1198 = vmatpush3.msra.mxu1 %v918_v34 }
 0x44d   :  { %v1190_v35 = vpop.f32.mrf.mxu1 }
 0x44e   :  { %v913_v56 = vadd.f32 %v1190_v35, %v1077_v33 }
 0x44f   :  { %v907_v36 = vpop.f32.mrf.mxu1 }
 0x450   :  { %v908_v60 = vadd.f32 %v1077_v33, %v907_v36  ;;  %v917_v38 = vmax.f32 %v913_v56, 0.0 }
 0x452   :  { %v916_v37 = vmax.f32 %v908_v60, 0.0 }
 0x454   :  { %1199 = vmatprep.mubr.msk.f32.mxu1 %vm41_vm0, %v916_v37 }
 0x455   :  { %1200 = vmatmul.mubr.msk.f32.vlgmr.msra.gmra.mxu1 %vm41_vm0, %v917_v38 }
 0x456   :  { %1319 = shalt.err (!%p1316_p4)
}
 0x457   :  { %s1363_s5 = smov 128   ;;  %s1364_s25 = smov 8   ;;  %v1080_v8 = vld [vmem:[%s1800_s7] ss:$0 sm:$0xff] }
 0x458   :  { %1033 = dma.vmem_to_hbm [thread:$0]  %s1028_s6, 256, %s1801_s8, [#allocation3], %s1363_s5, %s1363_s5, %s1364_s25  }
 0x459   :  { %s1365_s8 = smov [#allocation4]  }
 0x45a   :  { %s1039_s30 = sshll.u32 %s1365_s8, 4  ;;  %s1040_s30 = int_to_ptr.vmem [resolvable:$true] %s1039_s30 }
 0x45b   :  { %s1328_s7 = scalar_lea.vmem %s1040_s30, 256  ;;  %p1333_p6 = scmp.lt.s32.totalorder %s1040_s30, %s1040_s30 }
 0x45c   :  { %p1329_p5 = scmp.ne.s32.totalorder %s1040_s30, %s1328_s7  ;;  %p1334_p7 = scmp.lt.s32.totalorder %s1328_s7, %s1328_s7 }
 0x45e   :  { %p1335_p8 = por %p1334_p7, %p1333_p6 }
 0x460   :  { %p1336_p9 = pnand %p1335_p8, %p1329_p5 }
 0x515   :  { %v1201_v20 = vpop.f32.mrf.mxu1 }
 0x516   :  { %v1007_v42 = vadd.f32 %v1201_v20, %v1080_v8 }
 0x517   :  { %v1001_v43 = vpop.f32.mrf.mxu1 }
 0x518   :  { %v1011_v44 = vsub.f32 0.0, %v1007_v42  ;;  %v1002_v45 = vadd.f32 %v1080_v8, %v1001_v43 }
 0x51a   :  { %v1014_v47 = vmul.f32 1.442695, %v1011_v44  ;;  %v1010_v12 = vsub.f32 0.0, %v1002_v45 }
 0x51c   :  { %1300 = vpow2.f32 %v1014_v47  ;;  %v1012_v24 = vmul.f32 1.442695, %v1010_v12 }
 0x51e   :  { %1302 = vpow2.f32 %v1012_v24 }
 0x529   :  { %v1301_v50 = vpop.eup %1300 }
 0x52a   :  { %v1017_v51 = vadd.f32 1.0, %v1301_v50 }
 0x52b   :  { %v1303_v27 = vpop.eup %1302 }
 0x52c   :  { %1304 = vrcp.f32 %v1017_v51  ;;  %v1016_v52 = vadd.f32 1.0, %v1303_v27 }
 0x52e   :  { %1306 = vrcp.f32 %v1016_v52 }
 0x539   :  { %v1305_v53 = vpop.eup %1304 }
 0x53a   :  { %1021 = vst.msk [vmem:[#allocation4 + $0x8] sm:$0xff] %vm377_vm4, %v1305_v53 }
 0x53b   :  { %v1307_v39 = vpop.eup %1306 }
 0x53c   :  { %1020 = vst.msk [vmem:[#allocation4] sm:$0xff] %vm377_vm4, %v1307_v39 }
 0x53d   :  { %1339 = shalt.err (!%p1336_p9)
}
 0x53e   :  { %1045 = dma.vmem_to_hbm [thread:$0]  %s1040_s30, 256, %s1802_s9, [#allocation5], %s1363_s5, %s1363_s5, %s1364_s25  }
 0x53f   :  { %1348 = dma.done.wait [#allocation3], 256  }
 0x540   :  { %1349 = vsyncadd [#allocation3], 4294967040 }
 0x541   :  { %1350 = dma.done.wait [#allocation5], 256  }
 0x542   :  { %1351 = vsyncadd [#allocation5], 4294967040 }
 0x543   :  { %1052 = vsyncpa [#allocation3], 1 }
 0x544   :  { %1053 = vsyncpa [#allocation5], 1 }

</bundles_post_ra>
